<compile_context>
chip_gen: v7x
topology: tpu7x:2x2x1
jax: 0.10.0
libtpu: 0.0.40
codegen_flags: <defaults>
</compile_context>

<pallas_src>
import math

import jax
import jax.numpy as jnp
from jax.experimental import pallas as pl
from jax.experimental.pallas import tpu as pltpu


# ---------------------------------------------------------------------------
# Setup (PyTorch __init__ equivalent) — plain JAX, not part of the hot path.
# ---------------------------------------------------------------------------
def make_position_encoding_table(max_seq_len: int, pe_dim: int,
                                 dtype=jnp.float32) -> jnp.ndarray:
    """Replicates PositionEncoding.__init__: pe[k, :d]=sin(g), pe[k, d:]=cos(g).

    Build the table in the model dtype so the forward pass never has to emit a
    separate cast op over the whole slab.
    """
    assert pe_dim % 2 == 0
    d = pe_dim // 2
    k = jnp.arange(max_seq_len, dtype=jnp.float32)[:, None]          # [L, 1]
    i = jnp.arange(d, dtype=jnp.float32)[None, :]                    # [1, d]
    g = k / jnp.power(10000.0, 2.0 * i / pe_dim)                     # [L, d]
    pe = jnp.concatenate([jnp.sin(g), jnp.cos(g)], axis=-1)          # [L, 2d]
    return pe.astype(dtype)


# ---------------------------------------------------------------------------
# Kernel
# ---------------------------------------------------------------------------
def _pe_add_kernel(x_ref, pe_ref, o_ref):
    # x_ref / o_ref: (tile, 128) block of the current batch element (batch dim
    # squeezed out of the block); pe_ref: matching (tile, 128) pe block.
    o_ref[...] = x_ref[...] + pe_ref[...]


# ---------------------------------------------------------------------------
# Tiling helpers
# ---------------------------------------------------------------------------
def _round_up(n: int, m: int) -> int:
    return -(-n // m) * m


def _device_tuning():
    """Per-generation (max_block_bytes, vmem_limit_bytes or None)."""
    try:
        kind = jax.devices()[0].device_kind.lower()
    except Exception:  # pragma: no cover - defensive
        kind = ""
    if "v7" in kind or "tpu7" in kind:
        # 64 MiB physical VMEM: 3 streams x 2 buffers x 4 MiB = 24 MiB + slack.
        return 4 << 20, 40 << 20
    if "v6" in kind:
        # 128 MiB physical, 32 MiB default scoped: raise explicitly.
        return 6 << 20, 48 << 20
    if "v5p" in kind:
        return 4 << 20, 48 << 20
    # v5e / unknown: 16 MiB default scoped VMEM -> 3 x 2 x 2 MiB = 12 MiB fits.
    return 2 << 20, None


def _sublane_multiple(itemsize: int) -> int:
    # Sub-32-bit dtypes pack along sublanes: 8 for f32, 16 for bf16, 32 for i8.
    return max(8, 32 // itemsize)


def _choose_tile(total_rows: int, itemsize: int, lanes: int,
                 max_block_bytes: int, min_grid_rows: int) -> int:
    """Sublane-axis tile: full extent if small, otherwise a multiple of the
    dtype packing factor sized to stay under max_block_bytes, and capped so
    the row-tile grid axis has >= min_grid_rows steps (megacore / pipeline)."""
    mult = _sublane_multiple(itemsize)
    max_rows = max(mult, (max_block_bytes // (lanes * itemsize)) // mult * mult)
    if min_grid_rows > 1 and total_rows > mult:
        cap = _round_up(max(1, -(-total_rows // min_grid_rows)), mult)
        max_rows = min(max_rows, cap)
    if total_rows <= max_rows:
        return total_rows            # single block == full dim (always legal)
    return max_rows                  # multiple of `mult`; ragged tail clipped


# ---------------------------------------------------------------------------
# Pallas wrapper (lane-dense path only; wrapper pads T so T*F % 128 == 0)
# ---------------------------------------------------------------------------
def _pe_add_lane_dense(x, pe_slab, *, max_block_bytes, vmem_limit_bytes,
                       min_grid_rows):
    B, T, F = x.shape
    lanes = 128
    assert (T * F) % lanes == 0
    R = (T * F) // lanes
    itemsize = x.dtype.itemsize

    # Metadata-only reshapes: layout plumbing so the output last dim is a full
    # 128-lane slab (unmasked vst stores).
    x_r = x.reshape(B, R, lanes)
    pe_r = pe_slab.reshape(R, lanes)

    tR = _choose_tile(R, itemsize, lanes, max_block_bytes, min_grid_rows)

    cost = pl.CostEstimate(
        flops=B * R * lanes,
        transcendentals=0,
        bytes_accessed=(2 * B + 1) * R * lanes * itemsize,
    )

    cp_kwargs = dict(dimension_semantics=("parallel", "parallel"))
    if vmem_limit_bytes is not None:
        cp_kwargs["vmem_limit_bytes"] = int(vmem_limit_bytes)

    out = pl.pallas_call(
        _pe_add_kernel,
        out_shape=jax.ShapeDtypeStruct((B, R, lanes), x.dtype),
        grid_spec=pltpu.PrefetchScalarGridSpec(
            num_scalar_prefetch=0,
            grid=(pl.cdiv(R, tR), B),        # pe-varying axis OUTER, batch INNER
            in_specs=[
                pl.BlockSpec((None, tR, lanes), lambda r, b: (b, r, 0)),   # x
                pl.BlockSpec((tR, lanes), lambda r, b: (r, 0)),            # pe
            ],
            out_specs=pl.BlockSpec((None, tR, lanes), lambda r, b: (b, r, 0)),
        ),
        compiler_params=pltpu.CompilerParams(**cp_kwargs),
        cost_estimate=cost,
    )(x_r, pe_r)
    return out.reshape(B, T, F)


# ---------------------------------------------------------------------------
# Forward pass (PyTorch forward equivalent)
# ---------------------------------------------------------------------------
def position_encoding_forward(x: jnp.ndarray, pe: jnp.ndarray, *,
                              use_pallas=None,
                              max_block_bytes=None,
                              vmem_limit_bytes=None) -> jnp.ndarray:
    """Forward pass: x + pe[:T, :], broadcast over batch. x is [T,F] or [B,T,F]."""
    squeeze_batch = x.ndim == 2
    if squeeze_batch:
        x = x[None, ...]
    assert x.ndim == 3
    B, T, F = x.shape
    max_seq_len, pe_dim = pe.shape
    assert T <= max_seq_len
    assert F == pe_dim

    # Static slice of the precomputed table. Build the table in the model
    # dtype (make_position_encoding_table(..., dtype=...)) so this cast never
    # fires in the hot path; it is only a fallback.
    pe_slab = pe[:T, :]
    if pe_slab.dtype != x.dtype:
        pe_slab = pe_slab.astype(x.dtype)

    if use_pallas is None:
        # Below ~1 MiB the pallas_call launch / per-step overhead dominates;
        # let XLA fuse the broadcast add instead.
        use_pallas = x.size * x.dtype.itemsize >= (1 << 20)

    if not use_pallas:
        out = x + pe_slab[None, :, :]
    else:
        dflt_block, dflt_vmem = _device_tuning()
        mbb = max_block_bytes if max_block_bytes is not None else dflt_block
        vlb = vmem_limit_bytes if vmem_limit_bytes is not None else dflt_vmem
        # Keep >= ~4 total grid steps when B is small so both v7x TCs get work.
        min_grid_rows = max(1, -(-4 // B))

        lanes = 128
        # Pad T so T_pad*F % 128 == 0 (at most 128/gcd(F,128)-1 dummy rows),
        # run the single lane-dense kernel, slice the result back.
        t_mult = lanes // math.gcd(F, lanes)
        T_pad = _round_up(T, t_mult)
        if T_pad != T:
            x_k = jnp.pad(x, ((0, 0), (0, T_pad - T), (0, 0)))
            pe_k = jnp.pad(pe_slab, ((0, T_pad - T), (0, 0)))
        else:
            x_k, pe_k = x, pe_slab

        out = _pe_add_lane_dense(x_k, pe_k,
                                 max_block_bytes=mbb,
                                 vmem_limit_bytes=vlb,
                                 min_grid_rows=min_grid_rows)
        if T_pad != T:
            out = out[:, :T, :]

    if squeeze_batch:
        out = out[0]
    return out


# ---------------------------------------------------------------------------
# Demo / self-test
# ---------------------------------------------------------------------------
if __name__ == "__main__":
    # Small shapes consistent with the module: max_seq_len=16, pe_dim=32, B=2, T=8.
    max_seq_len = 16
    pe_dim = 32
    B, T = 2, 8

    pe = make_position_encoding_table(max_seq_len, pe_dim)

    key = jax.random.PRNGKey(0)
    x = jax.random.normal(key, (B, T, pe_dim), dtype=jnp.float32)

    # Pallas kernel result (force the kernel path despite the tiny demo size).
    y = jax.block_until_ready(position_encoding_forward(x, pe, use_pallas=True))

    # Reference (pure JAX) check.
    y_ref = x + pe[:T, :][None, :, :]
    assert y.shape == x.shape and y.dtype == x.dtype
    assert jnp.allclose(y, y_ref, atol=1e-6), "mismatch vs reference"

    # 2-D ([T, F]) input path through the kernel.
    x2d = jax.random.normal(jax.random.PRNGKey(1), (T, pe_dim), dtype=jnp.float32)
    y2d = jax.block_until_ready(position_encoding_forward(x2d, pe, use_pallas=True))
    assert jnp.allclose(y2d, x2d + pe[:T, :], atol=1e-6), "2D mismatch vs reference"

    # Auto path: tiny input bypasses Pallas (XLA-fused add), same result.
    y_auto = jax.block_until_ready(position_encoding_forward(x, pe))
    assert jnp.allclose(y_auto, y_ref, atol=1e-6), "auto-path mismatch"

    # Non-128-aligned case (T*F % 128 != 0): handled by wrapper padding, still
    # a single lane-dense kernel with full-width stores.
    F_odd = 24
    pe_odd = make_position_encoding_table(max_seq_len, F_odd)
    x_odd = jax.random.normal(jax.random.PRNGKey(2), (B, T, F_odd), dtype=jnp.float32)
    y_odd = jax.block_until_ready(
        position_encoding_forward(x_odd, pe_odd, use_pallas=True))
    assert jnp.allclose(y_odd, x_odd + pe_odd[:T, :][None, :, :], atol=1e-6), \
        "padded-path mismatch vs reference"

    # bf16 path: pe table built directly in bf16 (no hot-path cast),
    # sublane tile uses the 16-row packing multiple.
    pe_bf16 = make_position_encoding_table(max_seq_len, pe_dim, dtype=jnp.bfloat16)
    x_bf16 = x.astype(jnp.bfloat16)
    y_bf16 = jax.block_until_ready(
        position_encoding_forward(x_bf16, pe_bf16, use_pallas=True))
    y_bf16_ref = x_bf16 + pe_bf16[:T, :][None, :, :]
    assert jnp.allclose(y_bf16.astype(jnp.float32),
                        y_bf16_ref.astype(jnp.float32), atol=1e-2), \
        "bf16-path mismatch vs reference"

    print("KERNEL_OK")
</pallas_src>

<mosaic_0001>
module attributes {stable_mosaic.version = 11 : i64} {
  func.func @_pe_add_kernel(%arg0: i32, %arg1: i32, %arg2: memref<1x2x128xf32, #tpu.memory_space<vmem>>, %arg3: memref<2x128xf32, #tpu.memory_space<vmem>>, %arg4: memref<1x2x128xf32, #tpu.memory_space<vmem>>) attributes {dimension_semantics = [#tpu.dimension_semantics<parallel>, #tpu.dimension_semantics<parallel>], iteration_bounds = array<i64: 1, 2>, scalar_prefetch = 0 : i64, scratch_operands = 0 : i64, tpu.core_type = #tpu.core_type<tc>, window_params = [{transform_indices = @transform_0, window_bounds = array<i64: 1, 2, 128>}, {transform_indices = @transform_1, window_bounds = array<i64: 2, 128>}, {transform_indices = @transform_2, window_bounds = array<i64: 1, 2, 128>}]} {
    %c0 = arith.constant 0 : index
    %c0_0 = arith.constant 0 : index
    %c0_1 = arith.constant 0 : index
    %0 = vector.load %arg2[%c0, %c0_0, %c0_1] : memref<1x2x128xf32, #tpu.memory_space<vmem>>, vector<1x2x128xf32>
    %1 = vector.shape_cast %0 : vector<1x2x128xf32> to vector<2x128xf32>
    %c0_2 = arith.constant 0 : index
    %c0_3 = arith.constant 0 : index
    %2 = vector.load %arg3[%c0_2, %c0_3] : memref<2x128xf32, #tpu.memory_space<vmem>>, vector<2x128xf32>
    %3 = arith.addf %1, %2 : vector<2x128xf32>
    %c0_4 = arith.constant 0 : index
    %c0_5 = arith.constant 0 : index
    %c0_6 = arith.constant 0 : index
    %4 = vector.load %arg4[%c0_4, %c0_5, %c0_6] : memref<1x2x128xf32, #tpu.memory_space<vmem>>, vector<1x2x128xf32>
    %5 = vector.shape_cast %4 : vector<1x2x128xf32> to vector<2x128xf32>
    %6 = vector.shape_cast %3 : vector<2x128xf32> to vector<1x2x128xf32>
    tpu.vector_store %arg4[%c0_4, %c0_5, %c0_6], %6 {strides = array<i32>} : memref<1x2x128xf32, #tpu.memory_space<vmem>>, vector<1x2x128xf32>,
    return
  }
  func.func @transform_0(%arg0: i32, %arg1: i32) -> (i32, i32, i32) {
    %c0_i32 = arith.constant 0 : i32
    %c0_i32_0 = arith.constant 0 : i32
    return %arg1, %arg0, %c0_i32 : i32, i32, i32
  }
  func.func @transform_1(%arg0: i32, %arg1: i32) -> (i32, i32) {
    %c0_i32 = arith.constant 0 : i32
    %c0_i32_0 = arith.constant 0 : i32
    return %arg0, %c0_i32 : i32, i32
  }
  func.func @transform_2(%arg0: i32, %arg1: i32) -> (i32, i32, i32) {
    %c0_i32 = arith.constant 0 : i32
    %c0_i32_0 = arith.constant 0 : i32
    return %arg1, %arg0, %c0_i32 : i32, i32, i32
  }
}

</mosaic_0001>

<bundles_post_ra>
// kernel: tpu_custom_call.1
= control target key start
LH: loop header
LB: loop body
LE: loop exit
PB: predicated region body
PF: predicated region fallthrough
CT: control target
= control target key end

     0   :  { %7 = vsyncpa [#allocation3], 0  ;;  %s689_s0 = inlined_call_operand.hbm [shape: f32[2,2,128], index: 0, kind: input, shape index: {}]   ;;  %s690_s1 = inlined_call_operand.vmem [shape: f32[2,128], index: 1, kind: input, shape index: {}]   ;;  %s691_s2 = inlined_call_operand.hbm [shape: f32[2,2,128], index: 2, kind: output, shape index: {}]  }
   0x1   :  { %9 = vsyncpa [#allocation3 + $0x1], 0 }
   0x2   :  { %10 = vsyncpa [#allocation4], 0 }
   0x3   :  { %12 = vsyncpa [#allocation4 + $0x1], 0  ;;  %s514_s9 = smov 0   ;;  %s516_s10 = smov 0  }
   0x4   :  { %s518_s11 = smov 0   ;;  %s520_s12 = smov 0  }
   0x5   :  { %s522_s13 = smov 0   ;;  %s524_s14 = smov 0  }
   0x6 LB: > { %s307_s15 = sadd.s32 4294967295, %s495_s14   ;;  %s308_s16 = sadd.s32 4294967294, %s495_s14   ;;  %s495_s14 = sphi %s524_s14, %s18_s14   ;;  %s491_s13 = sphi %s522_s13, %s707_s13   ;;  %s487_s12 = sphi %s520_s12, %s706_s12   ;;  %s483_s11 = sphi %s518_s11, %s705_s11   ;;  %s479_s10 = sphi %s516_s10, %s704_s10   ;;  %s475_s9 = sphi %s514_s9, %s703_s9  }
   0x7   : > { %s27_s17 = sadd.s32 1, %s491_s13  ;;  %s39_s18 = sadd.s32 1, %s483_s11 }
   0x8   : > { %p28_p0 = scmp.ge.s32.totalorder %s27_s17, 2  ;;  %p46_p1 = scmp.ne.s32.totalorder %s483_s11, %s479_s10 }
   0x9   : > { %p47_p2 = scmp.eq.s32.totalorder %s495_s14, 0  ;;  %p52_p3 = scmp.ne.s32.totalorder %s479_s10, %s475_s9 }
   0xa   : > { %s709_s17 = smov (%p28_p0, %s27_s17), 0  ;;  %p53_p5 = scmp.eq.s32.totalorder %s307_s15, 0 }
   0xb   : > { %p555_p4 = por %p47_p2, %p46_p1  ;;  %s34_s20 = ssub.s32 %s491_s13, %s709_s17 }
   0xc   : > { %p104_p6 = scmp.eq.s32.totalorder %s307_s15, 1  ;;  %p37_p7 = scmp.eq.s32.totalorder %s34_s20, 0 }
   0xd   : > { %p561_p8 = por %p53_p5, %p52_p3  ;;  %p110_p10 = scmp.eq.s32.totalorder %s308_s16, 1 }
   0xe   : > { %p565_p9 = por %p104_p6, %p46_p1  ;;  %p333_p13 = scmp.lt.s32.totalorder %s495_s14, 2 }
   0xf   : > { %s570_s23 = scalar_select %p37_p7, %s483_s11, %s39_s18  }
  0x10   : > { %s695_s22 = scalar_select %p565_p9, 1, 0 }
  0x11   : > { %p572_p11 = por %p110_p10, %p52_p3  ;;  %s137_s25 = sand.u32 1, %s483_s11  }
  0x12   : > { %s312_s26 = sshll.u32 %s137_s25, 1  ;;  %s313_s27 = sshll.u32 %s491_s13, 5 }
  0x13   : > { %s696_s24 = scalar_select %p572_p11, 1, 0 }
  0x14   : > { %s583_s30 = scalar_lea.hbm %s689_s0, %s313_s27  ;;  %s141_s3 = scalar_lea.vmem [#allocation2], %s312_s26 }
  0x15   : > { %s149_s4 = sshll.u32 %s141_s3, 4  ;;  %p589_p0 = pnand %p333_p13, %p555_p4  ;;  %s585_s4 = int_to_ptr.vmem [resolvable:$true] %s149_s4 }
  0x16   : > { %s138_s6 = scalar_lea.sflag [#allocation3], %s137_s25  ;;  %s383_s7 = scalar_lea.hbm %s583_s30, 32 }
  0x17   : > { %p384_p3 = scmp.ne.s32.totalorder %s583_s30, %s383_s7  ;;  %p385_p5 = pneg %p589_p0 }
  0x18   : > { %s388_s16 = scalar_lea.hbm %s689_s0, 64  ;;  %p389_p4 = scmp.lt.u32.totalorder %s583_s30, %s689_s0 }
  0x19   : > { %p386_p6 = pnand %p385_p5, %p384_p3  ;;  %p390_p10 = scmp.lt.u32.totalorder %s388_s16, %s383_s7 }
  0x1a   : > { %p392_p12 = scmp.lt.u32.totalorder %s383_s7, %s583_s30 }
  0x1b   : > { %p387_p7 = pneg %p386_p6  ;;  %p391_p13 = por %p390_p10, %p389_p4 }
  0x1d   : > { %p393_p1 = por %p392_p12, %p391_p13 }
  0x1f   : > { %p394_p2 = pnand %p393_p1, %p387_p7 }
  0x21   : > { %397 = shalt.err (!%p394_p2)
}
  0x22   : > { %s398_s20 = scalar_lea.vmem %s585_s4, 32  ;;  %s497_s25 = smov [#allocation2]  }
  0x23   : > { %p399_p3 = scmp.ne.s32.totalorder %s585_s4, %s398_s20  ;;  %s403_s26 = sshll.u32 %s497_s25, 4  ;;  %s404_s26 = int_to_ptr.vmem [resolvable:$false] %s403_s26 }
  0x24   : > { %s405_s27 = scalar_lea.vmem %s404_s26, 64  ;;  %p406_p9 = scmp.lt.s32.totalorder %s585_s4, %s404_s26 }
  0x25   : > { %p401_p6 = pnand %p399_p3, %p385_p5  ;;  %p407_p4 = scmp.lt.s32.totalorder %s405_s27, %s398_s20 }
  0x27   : > { %p402_p11 = pneg %p401_p6  ;;  %p408_p10 = por %p407_p4, %p406_p9 }
  0x29   : > { %p409_p12 = pnand %p408_p10, %p402_p11 }
  0x2b   : > { %412 = shalt.err (!%p409_p12)
}
  0x2c   : > { %328 = dma.hbm_to_vmem [thread:$0]  (!%p589_p0), %s583_s30, 32, %s585_s4, %s138_s6  }
  0x2d   : > { %p698_p1 = scmp.lt.s32.totalorder %s495_s14, 3  ;;  %p699_p2 = scmp.ge.s32.totalorder %s495_s14, 1 }
  0x2f   : > { %p155_p5 = pnand %p699_p2, %p698_p1 }
  0x30   : > { %s625_s28 = sand.u32 (!%p155_p5), 1, %s479_s10  }
  0x31   : > { %158 = sbr.rel (%p155_p5) target bundleno = 83 (0x53), region = 28  ;;  %s315_s29 = sshll.u32 (!%p155_p5), %s625_s28, 1 }
  0x32   : > { %s161_s3 = scalar_lea.sflag (!%p155_p5), [#allocation3], %s625_s28  ;;  %s164_s7 = scalar_lea.vmem (!%p155_p5), [#allocation2], %s315_s29 }
  0x38   : > { %466 = dma.done.wait (%p561_p8), %s161_s3, 32  }
  0x39   : > { %468 = vsyncadd (%p561_p8), %s161_s3, 4294967264  ;;  %s188_s30 = scalar_lea.vmem [#allocation5], %s315_s29  ;;  %s318_s5 = sshll.u32 %s487_s12, 5  ;;  %v193_v0 = vld [vmem:[%s164_s7] sm:$0x3] }
  0x3a   : > { %s212_s4 = sshll.u32 %s188_s30, 4  ;;  %v194_v1 = vld [vmem:[%s690_s1] sm:$0x3]  ;;  %s642_s21 = scalar_lea.hbm %s691_s2, %s318_s5  ;;  %s637_s4 = int_to_ptr.vmem [resolvable:$true] %s212_s4 }
  0x3b   : > { %v195_v2 = vadd.f32 %v194_v1, %v193_v0  ;;  %s198_s18 = scalar_lea.sflag [#allocation4], %s625_s28  ;;  %s413_s19 = scalar_lea.vmem %s637_s4, 32 }
  0x3c   : > { %p414_p8 = scmp.ne.s32.totalorder %s637_s4, %s413_s19  ;;  %p700_p9 = scmp.ne.s32.totalorder %s695_s22, 0 }
  0x3d   : > { %196 = vst [vmem:[%s188_s30] sm:$0x3] %v195_v2  ;;  %s498_s12 = smov [#allocation5]  }
  0x3e   : > { %p415_p11 = pnand %p414_p8, %p700_p9  ;;  %s417_s20 = sshll.u32 %s498_s12, 4  ;;  %s418_s20 = int_to_ptr.vmem [resolvable:$false] %s417_s20 }
  0x3f   : > { %s419_s25 = scalar_lea.vmem %s418_s20, 64  ;;  %p420_p7 = scmp.lt.s32.totalorder %s637_s4, %s418_s20 }
  0x40   : > { %p416_p0 = pneg %p415_p11  ;;  %p421_p13 = scmp.lt.s32.totalorder %s419_s25, %s413_s19 }
  0x42   : > { %p422_p3 = por %p421_p13, %p420_p7 }
  0x44   : > { %p423_p6 = pnand %p422_p3, %p416_p0 }
  0x46   : > { %426 = shalt.err (!%p423_p6)
}
  0x47   : > { %s427_s26 = scalar_lea.hbm %s642_s21, 32  ;;  %s431_s29 = scalar_lea.hbm %s691_s2, 64 }
  0x48   : > { %p428_p4 = scmp.ne.s32.totalorder %s642_s21, %s427_s26  ;;  %p432_p1 = scmp.lt.u32.totalorder %s642_s21, %s691_s2 }
  0x49   : > { %p433_p2 = scmp.lt.u32.totalorder %s431_s29, %s427_s26  ;;  %p435_p8 = scmp.lt.u32.totalorder %s427_s26, %s642_s21 }
  0x4a   : > { %p429_p10 = pnand %p428_p4, %p700_p9 }
  0x4b   : > { %p434_p5 = por %p433_p2, %p432_p1 }
  0x4c   : > { %p430_p12 = pneg %p429_p10 }
  0x4d   : > { %p436_p11 = por %p435_p8, %p434_p5 }
  0x4f   : > { %p437_p0 = pnand %p436_p11, %p430_p12 }
  0x51   : > { %440 = shalt.err (!%p437_p0)
}
  0x52   : > { %323 = dma.vmem_to_hbm [thread:$0]  (%p700_p9), %s637_s4, 32, %s642_s21, %s198_s18  }
  0x53 PF: > { %s224_s30 = sand.u32 1, %s475_s9   ;;  %p701_p7 = scmp.ne.s32.totalorder %s696_s24, 0 }
  0x54   : > { %p702_p13 = scmp.ge.s32.totalorder %s495_s14, 2  ;;  %s225_s5 = scalar_lea.sflag [#allocation4], %s224_s30 }
  0x56   : > { %p330_p3 = pnand %p702_p13, %p701_p7 }
  0x58   : > { %470 = dma.done.wait (!%p330_p3), %s225_s5, 32  }
  0x59   : > { %472 = vsyncadd (!%p330_p3), %s225_s5, 4294967264  ;;  %s18_s14 = sadd.s32 1, %s495_s14   ;;  %s703_s9 = smov %s479_s10 }
  0x5a   : > { %p15_p6 = scmp.ge.s32.totalorder %s18_s14, 4   ;;  %s704_s10 = smov %s483_s11 }
  0x5b   : > { %s705_s11 = smov %s570_s23  ;;  %s706_s12 = smov %s491_s13 }
  0x5c   : > { %s707_s13 = smov %s709_s17  ;;  %17 = sbr.rel (!%p15_p6) target bundleno = 6 (0x6), region = 76 }
  0x63   :  { %230 = vsyncpa [#allocation3], 1 }
  0x64   :  { %232 = vsyncpa [#allocation3 + $0x1], 1 }
  0x65   :  { %233 = vsyncpa [#allocation4], 1 }
  0x66   :  { %235 = vsyncpa [#allocation4 + $0x1], 1 }

</bundles_post_ra>
